<compile_context>
chip_gen: v6e
topology: v6e:2x2x1
jax: 0.10.0
libtpu: 0.0.40
codegen_flags: <defaults>
</compile_context>

<pallas_src>
import numpy as np
import jax
import jax.numpy as jnp
from jax.experimental import pallas as pl

# ----------------------------- "args" (deterministic, synthetic) ------------
INPUT_N = 10
OUTPUT_N = 10
SEQ_T = INPUT_N + OUTPUT_N          # 20
DCT_USED = 15
GLOBAL_MIN = -1.1
GLOBAL_MAX = 1.7
_SCALE = 2.0 / (GLOBAL_MAX - GLOBAL_MIN)
_BIAS = -GLOBAL_MIN * _SCALE - 1.0

D_PAD = 128                         # DCT axis padded 15 -> 128 (lane-dense store)
F_PAD = 232                         # 96 + 66 + 36 + 21 + 12 = 231 rows, padded to /8


# ----------------------------- constant construction ------------------------
def get_dct_matrix(N):
    dct_m = np.eye(N)
    for k in np.arange(N):
        for i in np.arange(N):
            w = np.sqrt(2 / N)
            if k == 0:
                w = np.sqrt(1 / N)
            dct_m[k, i] = w * np.cos(np.pi * (i + 1 / 2) * k / N)
    idct_m = np.linalg.inv(dct_m)
    return dct_m.astype(np.float32), idct_m.astype(np.float32)


def make_down_matrix(index, n_in_joints):
    """Averaging matrix so that `down(x, index) == A @ x` over the feature axis."""
    n_out = len(index)
    A = np.zeros((n_out * 3, n_in_joints * 3), np.float32)
    for i, grp in enumerate(index):
        w = 1.0 / len(grp)
        for j in grp:
            for c in range(3):
                A[i * 3 + c, j * 3 + c] = w
    return A


JOINT_TO_IGNORE = np.array([0, 1, 6, 11, 16, 20, 23, 24, 28, 31])
DIMS_TO_IGNORE = np.concatenate(
    (JOINT_TO_IGNORE * 3, JOINT_TO_IGNORE * 3 + 1, JOINT_TO_IGNORE * 3 + 2))
DIM_USED = np.setdiff1d(np.arange(96), DIMS_TO_IGNORE)          # 66 dims (22 joints)

INDEX2212 = [[0], [1, 2, 3], [4], [5, 6, 7], [8, 9], [10, 11],
             [12], [13], [14, 15, 16], [17], [18], [19, 20, 21]]
INDEX127 = [[0, 1], [2, 3], [4, 5], [6, 7], [7, 8], [9, 10], [10, 11]]
INDEX74 = [[0, 2], [1, 2], [3, 4], [5, 6]]

A2212 = make_down_matrix(INDEX2212, 22)                         # (36, 66)
A127 = make_down_matrix(INDEX127, 12)                           # (21, 36)
A74 = make_down_matrix(INDEX74, 7)                              # (12, 21)

# Precompose the whole mean-pool chain (all map directly from the 66 used dims)
A12_66 = A2212                                                  # (36, 66)
A7_66 = A127 @ A2212                                            # (21, 66)
A4_66 = A74 @ A7_66                                             # (12, 66)
A_STACK_66 = np.concatenate([A12_66, A7_66, A4_66], axis=0)     # (69, 66)
A_FULL96 = np.zeros((69, 96), np.float32)
A_FULL96[:, DIM_USED] = A_STACK_66                              # fold DIM_USED gather

# Effective DCT: fold "repeat last frame" padding, pre-scale by the affine slope,
# pad the DCT axis to 128 lanes so the fused output store is unmasked.
_DCT_M, _IDCT_M = get_dct_matrix(SEQ_T)
DCT_T_FULL = _DCT_M[:DCT_USED, :].T                             # (20, 15)
DCT_EFF = DCT_T_FULL[:INPUT_N].copy()                           # (10, 15)
DCT_EFF[INPUT_N - 1] += DCT_T_FULL[INPUT_N:].sum(axis=0)
DST_PAD_np = np.zeros((D_PAD, INPUT_N), np.float32)             # (128, 10)
DST_PAD_np[:DCT_USED, :] = (_SCALE * DCT_EFF).T
DST_PAD = jnp.asarray(DST_PAD_np)

# Fused selector matrix B: rows 0:96 identity (p32), 96:162 DIM_USED gather (p22),
# 162:231 precomposed mean-pool stack (p12/p7/p4), 231:232 zero padding.
B_FULL_np = np.zeros((F_PAD, 96), np.float32)
B_FULL_np[:96] = np.eye(96, dtype=np.float32)
B_FULL_np[96 + np.arange(66), DIM_USED] = 1.0
B_FULL_np[162:231] = A_FULL96
B_FULL = jnp.asarray(B_FULL_np)

# Row ranges of each representation inside the fused (F_PAD) output.
_ROWS = {'p32': (0, 96), 'p22': (96, 162), 'p12': (162, 198),
         'p7': (198, 219), 'p4': (219, 231)}

# jnp constants for the pure-JAX reference
A2212_J = jnp.asarray(A2212)
A127_J = jnp.asarray(A127)
A74_J = jnp.asarray(A74)
DCT_T_REF = jnp.asarray(DCT_T_FULL)


# ----------------------------- fused Pallas kernel --------------------------
def _proc_kernel(x_ref, dst_ref, b_ref, o_ref):
    # x:   (N, INPUT_N, 96)  raw input, whole batch resident in VMEM
    # dst: (128, INPUT_N)    padding-folded, pre-scaled DCT rows (zero past row 15)
    # b:   (232, 96)         stacked selector / mean-pool matrix (zero past row 231)
    # o:   (N, 232, 128)     fused lane-dense output: rows = [p32|p22|p12|p7|p4|pad],
    #                        lanes = DCT coeffs padded 15 -> 128
    dst = dst_ref[...]
    b = b_ref[...]
    # N is tiny (2): static unroll.  If N ever grows, stack samples along the M
    # dimension of the second matmul instead of adding grid steps.
    for n in range(x_ref.shape[0]):
        # (128, 10) @ (10, 96) -> (128, 96): scaled DCT coeffs, time axis contracted
        y = jnp.dot(dst, x_ref[n], preferred_element_type=jnp.float32)
        # XLU transpose (free slot) + (232, 96) @ (96, 128) -> (232, 128)
        # rows of b sum to 1 => the affine bias passes straight through
        o_ref[n] = jnp.dot(b, y.T, preferred_element_type=jnp.float32) + _BIAS


def _proc_pallas(x):
    """x: (N, INPUT_N, 96) -> (N, F_PAD, D_PAD) fused, lane-dense output."""
    N = x.shape[0]
    # No grid, no BlockSpecs: single invocation, whole arrays (~0.35 MiB total)
    # live in VMEM; one fully unmasked 128-lane store per sample.
    return pl.pallas_call(
        _proc_kernel,
        out_shape=jax.ShapeDtypeStruct((N, F_PAD, D_PAD), jnp.float32),
    )(x, DST_PAD, B_FULL)


# ----------------------------- forward pass ---------------------------------
def _proc_forward(x, preproc=True):
    """x: (N, input_n, 96) float32 -> dict of (N, F_s, dct_used) arrays."""
    if not preproc:
        return x
    out = _proc_pallas(x)                              # (N, 232, 128)
    # Only static slices remain in the wrapper (no transposes / gathers).
    return {k: out[:, a:b, :DCT_USED] for k, (a, b) in _ROWS.items()}


proc_forward = jax.jit(_proc_forward, static_argnames="preproc")


# ----------------------------- pure-JAX reference ---------------------------
def proc_reference(x):
    x32 = jnp.transpose(x, (0, 2, 1))
    x32 = jnp.concatenate(
        [x32, jnp.repeat(x32[:, :, -1:], OUTPUT_N, axis=2)], axis=2)
    x22 = x32[:, DIM_USED, :]

    def down(d, A):
        return jnp.einsum('of,nft->not', A, d)

    x12 = down(x22, A2212_J)
    x7 = down(x12, A127_J)
    x4 = down(x7, A74_J)

    def dctn(d):
        y = jnp.einsum('nft,td->nfd', d, DCT_T_REF)
        return (y - GLOBAL_MIN) / (GLOBAL_MAX - GLOBAL_MIN) * 2.0 - 1.0

    return {'p32': dctn(x32), 'p22': dctn(x22), 'p12': dctn(x12),
            'p7': dctn(x7), 'p4': dctn(x4)}


# ----------------------------- main ------------------------------------------
if __name__ == "__main__":
    key = jax.random.PRNGKey(0)
    N = 2
    x = jax.random.normal(key, (N, INPUT_N, 96), dtype=jnp.float32)

    out = proc_forward(x, preproc=True)
    out = jax.tree_util.tree_map(jax.block_until_ready, out)

    ref = proc_reference(x)
    for k in ['p32', 'p22', 'p12', 'p7', 'p4']:
        assert out[k].shape == ref[k].shape, (k, out[k].shape, ref[k].shape)
        np.testing.assert_allclose(np.asarray(out[k]), np.asarray(ref[k]),
                                   rtol=1e-4, atol=1e-4)

    print("KERNEL_OK")
</pallas_src>

<mosaic_0001>
module attributes {stable_mosaic.version = 11 : i64} {
  func.func @_proc_kernel(%arg0: memref<2x10x96xf32, #tpu.memory_space<vmem>>, %arg1: memref<128x10xf32, #tpu.memory_space<vmem>>, %arg2: memref<232x96xf32, #tpu.memory_space<vmem>>, %arg3: memref<2x232x128xf32, #tpu.memory_space<vmem>>) attributes {dimension_semantics = [], scalar_prefetch = 0 : i64, scratch_operands = 0 : i64, tpu.core_type = #tpu.core_type<tc>} {
    %c0 = arith.constant 0 : index
    %c0_0 = arith.constant 0 : index
    %0 = vector.load %arg1[%c0, %c0_0] : memref<128x10xf32, #tpu.memory_space<vmem>>, vector<128x10xf32>
    %c0_1 = arith.constant 0 : index
    %c0_2 = arith.constant 0 : index
    %1 = vector.load %arg2[%c0_1, %c0_2] : memref<232x96xf32, #tpu.memory_space<vmem>>, vector<232x96xf32>
    %c0_3 = arith.constant 0 : index
    %c0_4 = arith.constant 0 : index
    %c0_5 = arith.constant 0 : index
    %2 = vector.load %arg0[%c0_3, %c0_4, %c0_5] : memref<2x10x96xf32, #tpu.memory_space<vmem>>, vector<1x10x96xf32>
    %3 = vector.shape_cast %2 : vector<1x10x96xf32> to vector<10x96xf32>
    %cst = arith.constant dense<0.000000e+00> : vector<128x96xf32>
    %4 = tpu.matmul %0, %3, %cst {dimension_numbers = #tpu.dot_dimension_numbers<[1], [0], [0], [1], [0, 0, 1, 1], [], []>} : vector<128x10xf32>, vector<10x96xf32>, vector<128x96xf32> -> vector<128x96xf32>
    %5 = tpu.transpose %4, [1, 0] : vector<128x96xf32> -> vector<96x128xf32>
    %cst_6 = arith.constant dense<0.000000e+00> : vector<232x128xf32>
    %6 = tpu.matmul %1, %5, %cst_6 {dimension_numbers = #tpu.dot_dimension_numbers<[1], [0], [0], [1], [0, 0, 1, 1], [], []>} : vector<232x96xf32>, vector<96x128xf32>, vector<232x128xf32> -> vector<232x128xf32>
    %cst_7 = arith.constant -0.214285716 : f32
    %7 = vector.broadcast %cst_7 : f32 to vector<232x128xf32>
    %8 = arith.addf %6, %7 : vector<232x128xf32>
    %c0_8 = arith.constant 0 : index
    %c0_9 = arith.constant 0 : index
    %c0_10 = arith.constant 0 : index
    %9 = vector.load %arg3[%c0_8, %c0_9, %c0_10] : memref<2x232x128xf32, #tpu.memory_space<vmem>>, vector<1x232x128xf32>
    %10 = vector.shape_cast %9 : vector<1x232x128xf32> to vector<232x128xf32>
    %11 = vector.shape_cast %8 : vector<232x128xf32> to vector<1x232x128xf32>
    tpu.vector_store %arg3[%c0_8, %c0_9, %c0_10], %11 {strides = array<i32>} : memref<2x232x128xf32, #tpu.memory_space<vmem>>, vector<1x232x128xf32>,
    %c1 = arith.constant 1 : index
    %c0_11 = arith.constant 0 : index
    %c0_12 = arith.constant 0 : index
    %12 = vector.load %arg0[%c1, %c0_11, %c0_12] : memref<2x10x96xf32, #tpu.memory_space<vmem>>, vector<1x10x96xf32>
    %13 = vector.shape_cast %12 : vector<1x10x96xf32> to vector<10x96xf32>
    %cst_13 = arith.constant dense<0.000000e+00> : vector<128x96xf32>
    %14 = tpu.matmul %0, %13, %cst_13 {dimension_numbers = #tpu.dot_dimension_numbers<[1], [0], [0], [1], [0, 0, 1, 1], [], []>} : vector<128x10xf32>, vector<10x96xf32>, vector<128x96xf32> -> vector<128x96xf32>
    %15 = tpu.transpose %14, [1, 0] : vector<128x96xf32> -> vector<96x128xf32>
    %cst_14 = arith.constant dense<0.000000e+00> : vector<232x128xf32>
    %16 = tpu.matmul %1, %15, %cst_14 {dimension_numbers = #tpu.dot_dimension_numbers<[1], [0], [0], [1], [0, 0, 1, 1], [], []>} : vector<232x96xf32>, vector<96x128xf32>, vector<232x128xf32> -> vector<232x128xf32>
    %cst_15 = arith.constant -0.214285716 : f32
    %17 = vector.broadcast %cst_15 : f32 to vector<232x128xf32>
    %18 = arith.addf %16, %17 : vector<232x128xf32>
    %c1_16 = arith.constant 1 : index
    %c0_17 = arith.constant 0 : index
    %c0_18 = arith.constant 0 : index
    %19 = vector.load %arg3[%c1_16, %c0_17, %c0_18] : memref<2x232x128xf32, #tpu.memory_space<vmem>>, vector<1x232x128xf32>
    %20 = vector.shape_cast %19 : vector<1x232x128xf32> to vector<232x128xf32>
    %21 = vector.shape_cast %18 : vector<232x128xf32> to vector<1x232x128xf32>
    tpu.vector_store %arg3[%c1_16, %c0_17, %c0_18], %21 {strides = array<i32>} : memref<2x232x128xf32, #tpu.memory_space<vmem>>, vector<1x232x128xf32>,
    return
  }
}

</mosaic_0001>

<bundles_post_ra>
// kernel: _proc_forward.1
= control target key start
LH: loop header
LB: loop body
LE: loop exit
PB: predicated region body
PF: predicated region fallthrough
CT: control target
= control target key end

     0   :  { %8 = vsyncpa [#allocation3], 0  ;;  %s2256_s0 = inlined_call_operand.vmem [shape: f32[2,10,96], index: 0, kind: input, shape index: {}]   ;;  %s2257_s1 = inlined_call_operand.hbm [shape: f32[128,10], index: 1, kind: input, shape index: {}]   ;;  %s2258_s2 = inlined_call_operand.hbm [shape: f32[232,96], index: 2, kind: input, shape index: {}]   ;;  %s2259_s3 = inlined_call_operand.vmem [shape: f32[2,232,128], index: 3, kind: output, shape index: {}]  }
   0x1   :  { %9 = vsyncpa [#allocation5], 0  ;;  %s1732_s12 = smov [#allocation2]  }
   0x2   :  { %s17_s13 = sshll.u32 %s1732_s12, 4  ;;  %s18_s13 = int_to_ptr.vmem [resolvable:$true] %s17_s13 }
   0x3   :  { %s1696_s14 = scalar_lea.vmem %s18_s13, 2048  ;;  %p1701_p1 = scmp.lt.s32.totalorder %s18_s13, %s18_s13 }
   0x4   :  { %p1697_p0 = scmp.ne.s32.totalorder %s18_s13, %s1696_s14  ;;  %p1702_p2 = scmp.lt.s32.totalorder %s1696_s14, %s1696_s14 }
   0x6   :  { %p1703_p3 = por %p1702_p2, %p1701_p1 }
   0x8   :  { %p1704_p4 = pnand %p1703_p3, %p1697_p0 }
   0xa   :  { %1707 = shalt.err (!%p1704_p4)
}
   0xb   :  { %s1733_s15 = smov 128   ;;  %s1734_s16 = smov 8  }
   0xc   :  { %23 = dma.hbm_to_vmem [thread:$0]  %s2257_s1, 2048, %s18_s13, [#allocation3], %s1733_s15, %s1733_s15, %s1734_s16  }
   0xd   :  { %s1735_s19 = smov [#allocation4]  }
   0xe   :  { %s29_s20 = sshll.u32 %s1735_s19, 4  ;;  %s30_s20 = int_to_ptr.vmem [resolvable:$true] %s29_s20 }
   0xf   :  { %s1716_s21 = scalar_lea.vmem %s30_s20, 3712  ;;  %p1721_p6 = scmp.lt.s32.totalorder %s30_s20, %s30_s20 }
  0x10   :  { %p1717_p5 = scmp.ne.s32.totalorder %s30_s20, %s1716_s21  ;;  %p1722_p7 = scmp.lt.s32.totalorder %s1716_s21, %s1716_s21 }
  0x12   :  { %p1723_p8 = por %p1722_p7, %p1721_p6 }
  0x14   :  { %p1724_p9 = pnand %p1723_p8, %p1717_p5 }
  0x16   :  { %1727 = shalt.err (!%p1724_p9)
}
  0x17   :  { %35 = dma.hbm_to_vmem [thread:$0]  %s2258_s2, 3712, %s30_s20, [#allocation5], %s1733_s15, %s1733_s15, %s1734_s16  }
  0x18   :  { %1728 = dma.done.wait [#allocation3], 2048  }
  0x19   :  { %1729 = vsyncadd [#allocation3], 4294965248 }
  0x1a   :  { %1730 = dma.done.wait [#allocation5], 3712  }
  0x1b   :  { %1731 = vsyncadd [#allocation5], 4294963584  ;;  %vm138_vm0 = vcmask 1041408   ;;  %v88_v0 = vld [vmem:[%s2256_s0 + $0x8] sm:$0x3]  ;;  %v87_v2 = vld [vmem:[%s2256_s0] sm:$0xff] }
  0x1c   :  { %v1170_v1 = vld [vmem:[%s2256_s0 + $0x18] sm:$0x3]  ;;  %1388 = vmatprep.subr.msk.mxu1 %vm138_vm0, %v88_v0  ;;  %v1169_v3 = vld [vmem:[%s2256_s0 + $0x10] sm:$0xff]  ;;  %v42_v4 = vld [vmem:[#allocation2] sm:$0xff]  ;;  %vm89_vm1 = vcmask 80896   ;;  %v1736_v20 = vmov 0.0  }
  0x1d   :  { %1535 = vmatprep.subr.msk.mxu0 %vm138_vm0, %v1170_v1  ;;  %1389 = vmatpush3.msk.msra.mxu1 %vm138_vm0, %v88_v0  ;;  %v43_v5 = vld [vmem:[#allocation2 + $0x8] sm:$0xff]  ;;  %v44_v6 = vld [vmem:[#allocation2 + $0x10] sm:$0xff]  ;;  %v45_v7 = vld [vmem:[#allocation2 + $0x18] sm:$0xff]  ;;  %vm1737_vm2 = vmmov 0   ;;  %vm287_vm3 = vcmask 785408  }
  0x1e   :  { %1536 = vmatpush3.msk.msra.mxu0 %vm138_vm0, %v1170_v1  ;;  %1390 = vmatprep.subr.mxu1 %v87_v2  ;;  %v46_v8 = vld [vmem:[#allocation2 + $0x20] sm:$0xff]  ;;  %v47_v9 = vld [vmem:[#allocation2 + $0x28] sm:$0xff]  ;;  %v48_v10 = vld [vmem:[#allocation2 + $0x30] sm:$0xff] }
  0x1f   :  { %1537 = vmatprep.subr.mxu0 %v1169_v3  ;;  %1391 = vmatpush3.msra.mxu1 %v87_v2  ;;  %v49_v11 = vld [vmem:[#allocation2 + $0x38] sm:$0xff]  ;;  %v50_v12 = vld [vmem:[#allocation2 + $0x40] sm:$0xff]  ;;  %v51_v13 = vld [vmem:[#allocation2 + $0x48] sm:$0xff] }
  0x20   :  { %1392 = vmatprep.mubr.msk.f32.mxu1 %vm89_vm1, %v42_v4  ;;  %1538 = vmatpush3.msra.mxu0 %v1169_v3  ;;  %v52_v14 = vld [vmem:[#allocation2 + $0x50] sm:$0xff]  ;;  %v53_v15 = vld [vmem:[#allocation2 + $0x58] sm:$0xff]  ;;  %v54_v16 = vld [vmem:[#allocation2 + $0x60] sm:$0xff] }
  0x21   :  { %1539 = vmatprep.mubr.msk.f32.mxu0 %vm89_vm1, %v42_v4  ;;  %1393 = vmatmul.mubr.msk.f32.vlgmr.msra.gmra.mxu1 %vm89_vm1, %v43_v5  ;;  %v55_v17 = vld [vmem:[#allocation2 + $0x68] sm:$0xff]  ;;  %v56_v18 = vld [vmem:[#allocation2 + $0x70] sm:$0xff]  ;;  %v57_v19 = vld [vmem:[#allocation2 + $0x78] sm:$0xff] }
  0x22   :  { %1540 = vmatmul.mubr.msk.f32.vlgmr.msra.gmra.mxu0 %vm89_vm1, %v43_v5  ;;  %1395 = vmatprep.mubr.msk.f32.mxu1 %vm89_vm1, %v44_v6  ;;  %v58_v53 = vld [vmem:[#allocation4] sm:$0xff]  ;;  %v59_v54 = vld [vmem:[#allocation4 + $0x8] sm:$0xff]  ;;  %v60_v55 = vld [vmem:[#allocation4 + $0x10] sm:$0xff] }
  0x23   :  { %1542 = vmatprep.mubr.msk.f32.mxu0 %vm89_vm1, %v44_v6  ;;  %1416 = vmatprep.subr.mxu1 %v1736_v20  ;;  %v61_v56 = vld [vmem:[#allocation4 + $0x18] sm:$0xff]  ;;  %v62_v57 = vld [vmem:[#allocation4 + $0x20] sm:$0xff]  ;;  %v63_v58 = vld [vmem:[#allocation4 + $0x28] sm:$0xff] }
  0x24   :  { %1563 = vmatprep.subr.mxu0 %v1736_v20  ;;  %v64_v59 = vld [vmem:[#allocation4 + $0x30] sm:$0xff]  ;;  %v65_v60 = vld [vmem:[#allocation4 + $0x38] sm:$0xff]  ;;  %v66_v61 = vld [vmem:[#allocation4 + $0x40] sm:$0xff] }
  0x25   :  { %1396 = vmatmul.mubr.msk.f32.gmra.mxu1 %vm89_vm1, %v45_v7  ;;  %v67_v62 = vld [vmem:[#allocation4 + $0x48] sm:$0xff]  ;;  %v68_v63 = vld [vmem:[#allocation4 + $0x50] sm:$0xff]  ;;  %v69_v0 = vld [vmem:[#allocation4 + $0x58] sm:$0xff] }
  0x26   :  { %1543 = vmatmul.mubr.msk.f32.gmra.mxu0 %vm89_vm1, %v45_v7  ;;  %1398 = vmatprep.mubr.msk.f32.mxu1 %vm89_vm1, %v46_v8  ;;  %v70_v1 = vld [vmem:[#allocation4 + $0x60] sm:$0xff]  ;;  %v71_v2 = vld [vmem:[#allocation4 + $0x68] sm:$0xff]  ;;  %v72_v3 = vld [vmem:[#allocation4 + $0x70] sm:$0xff] }
  0x27   :  { %1545 = vmatprep.mubr.msk.f32.mxu0 %vm89_vm1, %v46_v8  ;;  %v73_v4 = vld [vmem:[#allocation4 + $0x78] sm:$0xff]  ;;  %v74_v5 = vld [vmem:[#allocation4 + $0x80] sm:$0xff]  ;;  %v75_v6 = vld [vmem:[#allocation4 + $0x88] sm:$0xff] }
  0x28   :  { %v76_v7 = vld [vmem:[#allocation4 + $0x90] sm:$0xff]  ;;  %v77_v8 = vld [vmem:[#allocation4 + $0x98] sm:$0xff] }
  0x29   :  { %1399 = vmatmul.mubr.msk.f32.gmra.mxu1 %vm89_vm1, %v47_v9 }
  0x2a   :  { %1546 = vmatmul.mubr.msk.f32.gmra.mxu0 %vm89_vm1, %v47_v9  ;;  %1401 = vmatprep.mubr.msk.f32.mxu1 %vm89_vm1, %v48_v10  ;;  %v78_v9 = vld [vmem:[#allocation4 + $0xa0] sm:$0xff] }
  0x2b   :  { %1548 = vmatprep.mubr.msk.f32.mxu0 %vm89_vm1, %v48_v10  ;;  %v79_v10 = vld [vmem:[#allocation4 + $0xa8] sm:$0xff] }
  0x2d   :  { %1402 = vmatmul.mubr.msk.f32.gmra.mxu1 %vm89_vm1, %v49_v11 }
  0x2e   :  { %1549 = vmatmul.mubr.msk.f32.gmra.mxu0 %vm89_vm1, %v49_v11  ;;  %1404 = vmatprep.mubr.msk.f32.mxu1 %vm89_vm1, %v50_v12  ;;  %v80_v11 = vld [vmem:[#allocation4 + $0xb0] sm:$0xff] }
  0x2f   :  { %1551 = vmatprep.mubr.msk.f32.mxu0 %vm89_vm1, %v50_v12  ;;  %v81_v12 = vld [vmem:[#allocation4 + $0xb8] sm:$0xff] }
  0x31   :  { %1405 = vmatmul.mubr.msk.f32.gmra.mxu1 %vm89_vm1, %v51_v13 }
  0x32   :  { %1552 = vmatmul.mubr.msk.f32.gmra.mxu0 %vm89_vm1, %v51_v13  ;;  %1407 = vmatprep.mubr.msk.f32.mxu1 %vm89_vm1, %v52_v14  ;;  %v82_v13 = vld [vmem:[#allocation4 + $0xc0] sm:$0xff] }
  0x33   :  { %1554 = vmatprep.mubr.msk.f32.mxu0 %vm89_vm1, %v52_v14  ;;  %v83_v14 = vld [vmem:[#allocation4 + $0xc8] sm:$0xff] }
  0x35   :  { %1408 = vmatmul.mubr.msk.f32.gmra.mxu1 %vm89_vm1, %v53_v15 }
  0x36   :  { %1555 = vmatmul.mubr.msk.f32.gmra.mxu0 %vm89_vm1, %v53_v15  ;;  %1410 = vmatprep.mubr.msk.f32.mxu1 %vm89_vm1, %v54_v16  ;;  %v84_v15 = vld [vmem:[#allocation4 + $0xd0] sm:$0xff] }
  0x37   :  { %1557 = vmatprep.mubr.msk.f32.mxu0 %vm89_vm1, %v54_v16  ;;  %v85_v16 = vld [vmem:[#allocation4 + $0xd8] sm:$0xff] }
  0x39   :  { %1411 = vmatmul.mubr.msk.f32.gmra.mxu1 %vm89_vm1, %v55_v17 }
  0x3a   :  { %1558 = vmatmul.mubr.msk.f32.gmra.mxu0 %vm89_vm1, %v55_v17  ;;  %1413 = vmatprep.mubr.msk.f32.mxu1 %vm89_vm1, %v56_v18  ;;  %v86_v17 = vld [vmem:[#allocation4 + $0xe0] sm:$0xff] }
  0x3b   :  { %1560 = vmatprep.mubr.msk.f32.mxu0 %vm89_vm1, %v56_v18 }
  0x3d   :  { %1414 = vmatmul.mubr.msk.f32.gmra.mxu1 %vm89_vm1, %v57_v19 }
  0x3e   :  { %1561 = vmatmul.mubr.msk.f32.gmra.mxu0 %vm89_vm1, %v57_v19  ;;  %1448 = vmatprep.mubr.msk.f32.mxu1 %vm1737_vm2, %v1736_v20 }
  0x3f   :  { %1595 = vmatprep.mubr.msk.f32.mxu0 %vm1737_vm2, %v1736_v20 }
  0xe1   :  { %v1814_v21 = vpop.f32.mrf.mxu1 }
  0xe2   :  { %v1816_v22 = vpop.f32.mrf.mxu0 }
  0xe3   :  { %v1818_v23 = vpop.f32.mrf.mxu1 }
  0xe4   :  { %v1820_v24 = vpop.f32.mrf.mxu0 }
  0xe5   :  { %v1822_v25 = vpop.f32.mrf.mxu1 }
  0xe6   :  { %v1824_v26 = vpop.f32.mrf.mxu0 }
  0xe7   :  { %v1826_v27 = vpop.f32.mrf.mxu1 }
  0xe8   :  { %v1828_v28 = vpop.f32.mrf.mxu0 }
  0xe9   :  { %v1830_v29 = vpop.f32.mrf.mxu1 }
  0xea   :  { %v1832_v30 = vpop.f32.mrf.mxu0 }
  0xeb   :  { %v1834_v31 = vpop.f32.mrf.mxu1 }
  0xec   :  { %v1836_v32 = vpop.f32.mrf.mxu0 }
  0xed   :  { %v1403_v33 = vpop.f32.mrf.mxu1 }
  0xee   :  { %v1550_v34 = vpop.f32.mrf.mxu0 }
  0xef   :  { %v238_v35 = vpop.f32.mrf.mxu1 }
  0xf0   :  { %v764_v36 = vpop.f32.mrf.mxu0 }
  0xf1   :  { %v1406_v37 = vpop.f32.mrf.mxu1 }
  0xf2   :  { %v1553_v38 = vpop.f32.mrf.mxu0 }
  0xf3   :  { %v248_v39 = vpop.f32.mrf.mxu1 }
  0xf4   :  { %v774_v40 = vpop.f32.mrf.mxu0 }
  0xf5   :  { %v1409_v41 = vpop.f32.mrf.mxu1 }
  0xf6   :  { %v1556_v42 = vpop.f32.mrf.mxu0 }
  0xf7   :  { %v258_v43 = vpop.f32.mrf.mxu1 }
  0xf8   :  { %v784_v44 = vpop.f32.mrf.mxu0 }
  0xf9   :  { %v1412_v45 = vpop.f32.mrf.mxu1 }
  0xfa   :  { %v1559_v46 = vpop.f32.mrf.mxu0 }
  0xfb   :  { %v268_v47 = vpop.f32.mrf.mxu1 }
  0xfc   :  { %v794_v48 = vpop.f32.mrf.mxu0 }
  0xfd   :  { %v1415_v49 = vpop.f32.mrf.mxu1 }
  0xfe   :  { %v1562_v50 = vpop.f32.mrf.mxu0  ;;  %1417 = vmatpush3.xpose.msk.msra.mxu1 %vm287_vm3, %v1415_v49 }
  0xff   :  { %1564 = vmatpush3.xpose.msk.msra.mxu0 %vm287_vm3, %v1562_v50  ;;  %1418 = vmatprep.subr.mxu1 %v1736_v20  ;;  %v278_v51 = vpop.f32.mrf.mxu1 }
 0x100   :  { %1565 = vmatprep.subr.mxu0 %v1736_v20  ;;  %v804_v52 = vpop.f32.mrf.mxu0 }
 0x102   :  { %1419 = vmatpush3.xpose.msk.msra.mxu1 %vm287_vm3, %v278_v51 }
 0x103   :  { %1566 = vmatpush3.xpose.msk.msra.mxu0 %vm287_vm3, %v804_v52  ;;  %1420 = vmatprep.subr.mxu1 %v1736_v20 }
 0x104   :  { %1567 = vmatprep.subr.mxu0 %v1736_v20 }
 0x106   :  { %1421 = vmatpush3.xpose.msk.msra.mxu1 %vm287_vm3, %v1412_v45 }
 0x107   :  { %1568 = vmatpush3.xpose.msk.msra.mxu0 %vm287_vm3, %v1559_v46  ;;  %1422 = vmatprep.subr.mxu1 %v1736_v20 }
 0x108   :  { %1569 = vmatprep.subr.mxu0 %v1736_v20 }
 0x10a   :  { %1423 = vmatpush3.xpose.msk.msra.mxu1 %vm287_vm3, %v268_v47 }
 0x10b   :  { %1570 = vmatpush3.xpose.msk.msra.mxu0 %vm287_vm3, %v794_v48  ;;  %1424 = vmatprep.subr.mxu1 %v1736_v20 }
 0x10c   :  { %1571 = vmatprep.subr.mxu0 %v1736_v20 }
 0x10e   :  { %1425 = vmatpush3.xpose.msk.msra.mxu1 %vm287_vm3, %v1409_v41 }
 0x10f   :  { %1572 = vmatpush3.xpose.msk.msra.mxu0 %vm287_vm3, %v1556_v42  ;;  %1426 = vmatprep.subr.mxu1 %v1736_v20 }
 0x110   :  { %1573 = vmatprep.subr.mxu0 %v1736_v20 }
 0x112   :  { %1427 = vmatpush3.xpose.msk.msra.mxu1 %vm287_vm3, %v258_v43 }
 0x113   :  { %1574 = vmatpush3.xpose.msk.msra.mxu0 %vm287_vm3, %v784_v44  ;;  %1428 = vmatprep.subr.mxu1 %v1736_v20 }
 0x114   :  { %1575 = vmatprep.subr.mxu0 %v1736_v20 }
 0x116   :  { %1429 = vmatpush3.xpose.msk.msra.mxu1 %vm287_vm3, %v1406_v37 }
 0x117   :  { %1576 = vmatpush3.xpose.msk.msra.mxu0 %vm287_vm3, %v1553_v38  ;;  %1430 = vmatprep.subr.mxu1 %v1736_v20 }
 0x118   :  { %1577 = vmatprep.subr.mxu0 %v1736_v20 }
 0x11a   :  { %1431 = vmatpush3.xpose.msk.msra.mxu1 %vm287_vm3, %v248_v39 }
 0x11b   :  { %1578 = vmatpush3.xpose.msk.msra.mxu0 %vm287_vm3, %v774_v40  ;;  %1432 = vmatprep.subr.mxu1 %v1736_v20 }
 0x11c   :  { %1579 = vmatprep.subr.mxu0 %v1736_v20 }
 0x11e   :  { %1433 = vmatpush3.xpose.msk.msra.mxu1 %vm287_vm3, %v1403_v33 }
 0x11f   :  { %1580 = vmatpush3.xpose.msk.msra.mxu0 %vm287_vm3, %v1550_v34  ;;  %1434 = vmatprep.subr.mxu1 %v1736_v20 }
 0x120   :  { %1581 = vmatprep.subr.mxu0 %v1736_v20 }
 0x122   :  { %1435 = vmatpush3.xpose.msk.msra.mxu1 %vm287_vm3, %v238_v35 }
 0x123   :  { %1582 = vmatpush3.xpose.msk.msra.mxu0 %vm287_vm3, %v764_v36  ;;  %1436 = vmatprep.subr.mxu1 %v1736_v20 }
 0x124   :  { %1583 = vmatprep.subr.mxu0 %v1736_v20 }
 0x126   :  { %1437 = vmatpush3.xpose.msk.msra.mxu1 %vm287_vm3, %v1830_v29 }
 0x127   :  { %1584 = vmatpush3.xpose.msk.msra.mxu0 %vm287_vm3, %v1832_v30  ;;  %1438 = vmatprep.subr.mxu1 %v1736_v20 }
 0x128   :  { %1585 = vmatprep.subr.mxu0 %v1736_v20 }
 0x12a   :  { %1439 = vmatpush3.xpose.msk.msra.mxu1 %vm287_vm3, %v1834_v31 }
 0x12b   :  { %1586 = vmatpush3.xpose.msk.msra.mxu0 %vm287_vm3, %v1836_v32  ;;  %1440 = vmatprep.subr.mxu1 %v1736_v20 }
 0x12c   :  { %1587 = vmatprep.subr.mxu0 %v1736_v20 }
 0x12e   :  { %1441 = vmatpush3.xpose.msk.msra.mxu1 %vm287_vm3, %v1822_v25 }
 0x12f   :  { %1588 = vmatpush3.xpose.msk.msra.mxu0 %vm287_vm3, %v1824_v26  ;;  %1442 = vmatprep.subr.mxu1 %v1736_v20 }
 0x130   :  { %1589 = vmatprep.subr.mxu0 %v1736_v20 }
 0x132   :  { %1443 = vmatpush3.xpose.msk.msra.mxu1 %vm287_vm3, %v1826_v27 }
 0x133   :  { %1590 = vmatpush3.xpose.msk.msra.mxu0 %vm287_vm3, %v1828_v28  ;;  %1444 = vmatprep.subr.mxu1 %v1736_v20 }
 0x134   :  { %1591 = vmatprep.subr.mxu0 %v1736_v20 }
 0x136   :  { %1445 = vmatpush3.xpose.msk.msra.mxu1 %vm287_vm3, %v1814_v21 }
 0x137   :  { %1592 = vmatpush3.xpose.msk.msra.mxu0 %vm287_vm3, %v1816_v22  ;;  %1446 = vmatprep.subr.mxu1 %v1736_v20 }
 0x138   :  { %1593 = vmatprep.subr.mxu0 %v1736_v20 }
 0x13a   :  { %1447 = vmatpush3.xpose.msk.msra.mxu1 %vm287_vm3, %v1818_v23 }
 0x13b   :  { %1594 = vmatpush3.xpose.msk.msra.mxu0 %vm287_vm3, %v1820_v24 }
 0x13d   :  { %1449 = vmatmul.mubr.msk.f32.vlgmr.msra.gmra.mxu1 %vm287_vm3, %v58_v53 }
 0x13e   :  { %1596 = vmatmul.mubr.msk.f32.vlgmr.msra.gmra.mxu0 %vm287_vm3, %v58_v53  ;;  %1451 = vmatprep.mubr.msk.f32.mxu1 %vm1737_vm2, %v1736_v20 }
 0x13f   :  { %1598 = vmatprep.mubr.msk.f32.mxu0 %vm1737_vm2, %v1736_v20 }
 0x141   :  { %1452 = vmatmul.mubr.msk.f32.gmra.mxu1 %vm287_vm3, %v59_v54 }
 0x142   :  { %1599 = vmatmul.mubr.msk.f32.gmra.mxu0 %vm287_vm3, %v59_v54  ;;  %1454 = vmatprep.mubr.msk.f32.mxu1 %vm1737_vm2, %v1736_v20 }
 0x143   :  { %1601 = vmatprep.mubr.msk.f32.mxu0 %vm1737_vm2, %v1736_v20 }
 0x145   :  { %1455 = vmatmul.mubr.msk.f32.gmra.mxu1 %vm287_vm3, %v60_v55 }
 0x146   :  { %1602 = vmatmul.mubr.msk.f32.gmra.mxu0 %vm287_vm3, %v60_v55  ;;  %1457 = vmatprep.mubr.msk.f32.mxu1 %vm1737_vm2, %v1736_v20 }
 0x147   :  { %1604 = vmatprep.mubr.msk.f32.mxu0 %vm1737_vm2, %v1736_v20 }
 0x149   :  { %1458 = vmatmul.mubr.msk.f32.gmra.mxu1 %vm287_vm3, %v61_v56 }
 0x14a   :  { %1605 = vmatmul.mubr.msk.f32.gmra.mxu0 %vm287_vm3, %v61_v56  ;;  %1460 = vmatprep.mubr.msk.f32.mxu1 %vm1737_vm2, %v1736_v20 }
 0x14b   :  { %1607 = vmatprep.mubr.msk.f32.mxu0 %vm1737_vm2, %v1736_v20 }
 0x14d   :  { %1461 = vmatmul.mubr.msk.f32.gmra.mxu1 %vm287_vm3, %v62_v57 }
 0x14e   :  { %1608 = vmatmul.mubr.msk.f32.gmra.mxu0 %vm287_vm3, %v62_v57  ;;  %1463 = vmatprep.mubr.msk.f32.mxu1 %vm1737_vm2, %v1736_v20 }
 0x14f   :  { %1610 = vmatprep.mubr.msk.f32.mxu0 %vm1737_vm2, %v1736_v20 }
 0x151   :  { %1464 = vmatmul.mubr.msk.f32.gmra.mxu1 %vm287_vm3, %v63_v58 }
 0x152   :  { %1611 = vmatmul.mubr.msk.f32.gmra.mxu0 %vm287_vm3, %v63_v58  ;;  %1466 = vmatprep.mubr.msk.f32.mxu1 %vm1737_vm2, %v1736_v20 }
 0x153   :  { %1613 = vmatprep.mubr.msk.f32.mxu0 %vm1737_vm2, %v1736_v20 }
 0x155   :  { %1467 = vmatmul.mubr.msk.f32.gmra.mxu1 %vm287_vm3, %v64_v59 }
 0x156   :  { %1614 = vmatmul.mubr.msk.f32.gmra.mxu0 %vm287_vm3, %v64_v59  ;;  %1469 = vmatprep.mubr.msk.f32.mxu1 %vm1737_vm2, %v1736_v20 }
 0x157   :  { %1616 = vmatprep.mubr.msk.f32.mxu0 %vm1737_vm2, %v1736_v20 }
 0x159   :  { %1470 = vmatmul.mubr.msk.f32.gmra.mxu1 %vm287_vm3, %v65_v60 }
 0x15a   :  { %1617 = vmatmul.mubr.msk.f32.gmra.mxu0 %vm287_vm3, %v65_v60  ;;  %1472 = vmatprep.mubr.msk.f32.mxu1 %vm1737_vm2, %v1736_v20 }
 0x15b   :  { %1619 = vmatprep.mubr.msk.f32.mxu0 %vm1737_vm2, %v1736_v20 }
 0x15d   :  { %1473 = vmatmul.mubr.msk.f32.gmra.mxu1 %vm287_vm3, %v66_v61 }
 0x15e   :  { %1620 = vmatmul.mubr.msk.f32.gmra.mxu0 %vm287_vm3, %v66_v61  ;;  %1475 = vmatprep.mubr.msk.f32.mxu1 %vm1737_vm2, %v1736_v20 }
 0x15f   :  { %1622 = vmatprep.mubr.msk.f32.mxu0 %vm1737_vm2, %v1736_v20 }
 0x161   :  { %1476 = vmatmul.mubr.msk.f32.gmra.mxu1 %vm287_vm3, %v67_v62 }
 0x162   :  { %1623 = vmatmul.mubr.msk.f32.gmra.mxu0 %vm287_vm3, %v67_v62  ;;  %1478 = vmatprep.mubr.msk.f32.mxu1 %vm1737_vm2, %v1736_v20 }
 0x163   :  { %1625 = vmatprep.mubr.msk.f32.mxu0 %vm1737_vm2, %v1736_v20 }
 0x165   :  { %1479 = vmatmul.mubr.msk.f32.gmra.mxu1 %vm287_vm3, %v68_v63 }
 0x166   :  { %1626 = vmatmul.mubr.msk.f32.gmra.mxu0 %vm287_vm3, %v68_v63  ;;  %1481 = vmatprep.mubr.msk.f32.mxu1 %vm1737_vm2, %v1736_v20 }
 0x167   :  { %1628 = vmatprep.mubr.msk.f32.mxu0 %vm1737_vm2, %v1736_v20 }
 0x169   :  { %1482 = vmatmul.mubr.msk.f32.gmra.mxu1 %vm287_vm3, %v69_v0 }
 0x16a   :  { %1629 = vmatmul.mubr.msk.f32.gmra.mxu0 %vm287_vm3, %v69_v0  ;;  %1484 = vmatprep.mubr.msk.f32.mxu1 %vm1737_vm2, %v1736_v20 }
 0x16b   :  { %1631 = vmatprep.mubr.msk.f32.mxu0 %vm1737_vm2, %v1736_v20 }
 0x16d   :  { %1485 = vmatmul.mubr.msk.f32.gmra.mxu1 %vm287_vm3, %v70_v1 }
 0x16e   :  { %1632 = vmatmul.mubr.msk.f32.gmra.mxu0 %vm287_vm3, %v70_v1  ;;  %1487 = vmatprep.mubr.msk.f32.mxu1 %vm1737_vm2, %v1736_v20 }
 0x16f   :  { %1634 = vmatprep.mubr.msk.f32.mxu0 %vm1737_vm2, %v1736_v20 }
 0x171   :  { %1488 = vmatmul.mubr.msk.f32.gmra.mxu1 %vm287_vm3, %v71_v2 }
 0x172   :  { %1635 = vmatmul.mubr.msk.f32.gmra.mxu0 %vm287_vm3, %v71_v2  ;;  %1490 = vmatprep.mubr.msk.f32.mxu1 %vm1737_vm2, %v1736_v20 }
 0x173   :  { %1637 = vmatprep.mubr.msk.f32.mxu0 %vm1737_vm2, %v1736_v20 }
 0x175   :  { %1491 = vmatmul.mubr.msk.f32.gmra.mxu1 %vm287_vm3, %v72_v3 }
 0x176   :  { %1638 = vmatmul.mubr.msk.f32.gmra.mxu0 %vm287_vm3, %v72_v3  ;;  %1493 = vmatprep.mubr.msk.f32.mxu1 %vm1737_vm2, %v1736_v20 }
 0x177   :  { %1640 = vmatprep.mubr.msk.f32.mxu0 %vm1737_vm2, %v1736_v20 }
 0x179   :  { %1494 = vmatmul.mubr.msk.f32.gmra.mxu1 %vm287_vm3, %v73_v4 }
 0x17a   :  { %1641 = vmatmul.mubr.msk.f32.gmra.mxu0 %vm287_vm3, %v73_v4  ;;  %1496 = vmatprep.mubr.msk.f32.mxu1 %vm1737_vm2, %v1736_v20 }
 0x17b   :  { %1643 = vmatprep.mubr.msk.f32.mxu0 %vm1737_vm2, %v1736_v20 }
 0x17d   :  { %1497 = vmatmul.mubr.msk.f32.gmra.mxu1 %vm287_vm3, %v74_v5 }
 0x17e   :  { %1644 = vmatmul.mubr.msk.f32.gmra.mxu0 %vm287_vm3, %v74_v5  ;;  %1499 = vmatprep.mubr.msk.f32.mxu1 %vm1737_vm2, %v1736_v20 }
 0x17f   :  { %1646 = vmatprep.mubr.msk.f32.mxu0 %vm1737_vm2, %v1736_v20 }
 0x181   :  { %1500 = vmatmul.mubr.msk.f32.gmra.mxu1 %vm287_vm3, %v75_v6 }
 0x182   :  { %1647 = vmatmul.mubr.msk.f32.gmra.mxu0 %vm287_vm3, %v75_v6  ;;  %1502 = vmatprep.mubr.msk.f32.mxu1 %vm1737_vm2, %v1736_v20 }
 0x183   :  { %1649 = vmatprep.mubr.msk.f32.mxu0 %vm1737_vm2, %v1736_v20 }
 0x185   :  { %1503 = vmatmul.mubr.msk.f32.gmra.mxu1 %vm287_vm3, %v76_v7 }
 0x186   :  { %1650 = vmatmul.mubr.msk.f32.gmra.mxu0 %vm287_vm3, %v76_v7  ;;  %1505 = vmatprep.mubr.msk.f32.mxu1 %vm1737_vm2, %v1736_v20 }
 0x187   :  { %1652 = vmatprep.mubr.msk.f32.mxu0 %vm1737_vm2, %v1736_v20 }
 0x189   :  { %1506 = vmatmul.mubr.msk.f32.gmra.mxu1 %vm287_vm3, %v77_v8 }
 0x18a   :  { %1653 = vmatmul.mubr.msk.f32.gmra.mxu0 %vm287_vm3, %v77_v8  ;;  %1508 = vmatprep.mubr.msk.f32.mxu1 %vm1737_vm2, %v1736_v20 }
 0x18b   :  { %1655 = vmatprep.mubr.msk.f32.mxu0 %vm1737_vm2, %v1736_v20 }
 0x18d   :  { %1509 = vmatmul.mubr.msk.f32.gmra.mxu1 %vm287_vm3, %v78_v9 }
 0x18e   :  { %1656 = vmatmul.mubr.msk.f32.gmra.mxu0 %vm287_vm3, %v78_v9  ;;  %1511 = vmatprep.mubr.msk.f32.mxu1 %vm1737_vm2, %v1736_v20 }
 0x18f   :  { %1658 = vmatprep.mubr.msk.f32.mxu0 %vm1737_vm2, %v1736_v20 }
 0x191   :  { %1512 = vmatmul.mubr.msk.f32.gmra.mxu1 %vm287_vm3, %v79_v10 }
 0x192   :  { %1659 = vmatmul.mubr.msk.f32.gmra.mxu0 %vm287_vm3, %v79_v10  ;;  %1514 = vmatprep.mubr.msk.f32.mxu1 %vm1737_vm2, %v1736_v20 }
 0x193   :  { %1661 = vmatprep.mubr.msk.f32.mxu0 %vm1737_vm2, %v1736_v20 }
 0x195   :  { %1515 = vmatmul.mubr.msk.f32.gmra.mxu1 %vm287_vm3, %v80_v11 }
 0x196   :  { %1662 = vmatmul.mubr.msk.f32.gmra.mxu0 %vm287_vm3, %v80_v11  ;;  %1517 = vmatprep.mubr.msk.f32.mxu1 %vm1737_vm2, %v1736_v20 }
 0x197   :  { %1664 = vmatprep.mubr.msk.f32.mxu0 %vm1737_vm2, %v1736_v20 }
 0x199   :  { %1518 = vmatmul.mubr.msk.f32.gmra.mxu1 %vm287_vm3, %v81_v12 }
 0x19a   :  { %1665 = vmatmul.mubr.msk.f32.gmra.mxu0 %vm287_vm3, %v81_v12  ;;  %1520 = vmatprep.mubr.msk.f32.mxu1 %vm1737_vm2, %v1736_v20 }
 0x19b   :  { %1667 = vmatprep.mubr.msk.f32.mxu0 %vm1737_vm2, %v1736_v20 }
 0x19d   :  { %1521 = vmatmul.mubr.msk.f32.gmra.mxu1 %vm287_vm3, %v82_v13 }
 0x19e   :  { %1668 = vmatmul.mubr.msk.f32.gmra.mxu0 %vm287_vm3, %v82_v13  ;;  %1523 = vmatprep.mubr.msk.f32.mxu1 %vm1737_vm2, %v1736_v20 }
 0x19f   :  { %1670 = vmatprep.mubr.msk.f32.mxu0 %vm1737_vm2, %v1736_v20 }
 0x1a1   :  { %1524 = vmatmul.mubr.msk.f32.gmra.mxu1 %vm287_vm3, %v83_v14 }
 0x1a2   :  { %1671 = vmatmul.mubr.msk.f32.gmra.mxu0 %vm287_vm3, %v83_v14  ;;  %1526 = vmatprep.mubr.msk.f32.mxu1 %vm1737_vm2, %v1736_v20 }
 0x1a3   :  { %1673 = vmatprep.mubr.msk.f32.mxu0 %vm1737_vm2, %v1736_v20 }
 0x1a5   :  { %1527 = vmatmul.mubr.msk.f32.gmra.mxu1 %vm287_vm3, %v84_v15 }
 0x1a6   :  { %1674 = vmatmul.mubr.msk.f32.gmra.mxu0 %vm287_vm3, %v84_v15  ;;  %1529 = vmatprep.mubr.msk.f32.mxu1 %vm1737_vm2, %v1736_v20 }
 0x1a7   :  { %1676 = vmatprep.mubr.msk.f32.mxu0 %vm1737_vm2, %v1736_v20 }
 0x1a9   :  { %1530 = vmatmul.mubr.msk.f32.gmra.mxu1 %vm287_vm3, %v85_v16 }
 0x1aa   :  { %1677 = vmatmul.mubr.msk.f32.gmra.mxu0 %vm287_vm3, %v85_v16  ;;  %1532 = vmatprep.mubr.msk.f32.mxu1 %vm1737_vm2, %v1736_v20 }
 0x1ab   :  { %1679 = vmatprep.mubr.msk.f32.mxu0 %vm1737_vm2, %v1736_v20 }
 0x1ad   :  { %1533 = vmatmul.mubr.msk.f32.gmra.mxu1 %vm287_vm3, %v86_v17 }
 0x1ae   :  { %1680 = vmatmul.mubr.msk.f32.gmra.mxu0 %vm287_vm3, %v86_v17 }
 0x1fd   :  { %v489_v18 = vpop.f32.mrf.mxu1 }
 0x1fe   :  { %v927_v19 = vpop.f32.mrf.mxu0  ;;  %v490_v21 = vadd.f32 -0.21428572, %v489_v18 }
 0x1ff   :  { %v928_v22 = vadd.f32 -0.21428572, %v927_v19  ;;  %v1450_v23 = vpop.f32.mrf.mxu1 }
 0x200   :  { %v1597_v24 = vpop.f32.mrf.mxu0  ;;  %633 = vst [vmem:[%s2259_s3] sm:$0xff] %v490_v21 }
 0x201   :  { %1233 = vst [vmem:[%s2259_s3 + $0xe8] sm:$0xff] %v928_v22  ;;  %v494_v20 = vpop.f32.mrf.mxu1 }
 0x202   :  { %v932_v25 = vpop.f32.mrf.mxu0  ;;  %v495_v26 = vadd.f32 -0.21428572, %v494_v20 }
 0x203   :  { %v933_v27 = vadd.f32 -0.21428572, %v932_v25  ;;  %v1453_v28 = vpop.f32.mrf.mxu1 }
 0x204   :  { %v1600_v29 = vpop.f32.mrf.mxu0  ;;  %634 = vst [vmem:[%s2259_s3 + $0x8] sm:$0xff] %v495_v26 }
 0x205   :  { %1234 = vst [vmem:[%s2259_s3 + $0xf0] sm:$0xff] %v933_v27  ;;  %v499_v30 = vpop.f32.mrf.mxu1 }
 0x206   :  { %v937_v31 = vpop.f32.mrf.mxu0  ;;  %v500_v32 = vadd.f32 -0.21428572, %v499_v30 }
 0x207   :  { %v938_v33 = vadd.f32 -0.21428572, %v937_v31  ;;  %v1456_v34 = vpop.f32.mrf.mxu1 }
 0x208   :  { %v1603_v35 = vpop.f32.mrf.mxu0  ;;  %635 = vst [vmem:[%s2259_s3 + $0x10] sm:$0xff] %v500_v32 }
 0x209   :  { %1235 = vst [vmem:[%s2259_s3 + $0xf8] sm:$0xff] %v938_v33  ;;  %v504_v36 = vpop.f32.mrf.mxu1 }
 0x20a   :  { %v942_v37 = vpop.f32.mrf.mxu0  ;;  %v505_v38 = vadd.f32 -0.21428572, %v504_v36 }
 0x20b   :  { %v943_v39 = vadd.f32 -0.21428572, %v942_v37  ;;  %v1459_v40 = vpop.f32.mrf.mxu1 }
 0x20c   :  { %v1606_v41 = vpop.f32.mrf.mxu0  ;;  %636 = vst [vmem:[%s2259_s3 + $0x18] sm:$0xff] %v505_v38 }
 0x20d   :  { %1236 = vst [vmem:[%s2259_s3 + $0x100] sm:$0xff] %v943_v39  ;;  %v509_v42 = vpop.f32.mrf.mxu1 }
 0x20e   :  { %v947_v43 = vpop.f32.mrf.mxu0  ;;  %v510_v44 = vadd.f32 -0.21428572, %v509_v42 }
 0x20f   :  { %v948_v45 = vadd.f32 -0.21428572, %v947_v43  ;;  %v1462_v46 = vpop.f32.mrf.mxu1 }
 0x210   :  { %v1609_v47 = vpop.f32.mrf.mxu0  ;;  %637 = vst [vmem:[%s2259_s3 + $0x20] sm:$0xff] %v510_v44 }
 0x211   :  { %1237 = vst [vmem:[%s2259_s3 + $0x108] sm:$0xff] %v948_v45  ;;  %v514_v48 = vpop.f32.mrf.mxu1 }
 0x212   :  { %v952_v49 = vpop.f32.mrf.mxu0  ;;  %v515_v50 = vadd.f32 -0.21428572, %v514_v48 }
 0x213   :  { %v953_v51 = vadd.f32 -0.21428572, %v952_v49  ;;  %v1465_v52 = vpop.f32.mrf.mxu1 }
 0x214   :  { %v1612_v53 = vpop.f32.mrf.mxu0  ;;  %638 = vst [vmem:[%s2259_s3 + $0x28] sm:$0xff] %v515_v50 }
 0x215   :  { %1238 = vst [vmem:[%s2259_s3 + $0x110] sm:$0xff] %v953_v51  ;;  %v519_v54 = vpop.f32.mrf.mxu1 }
 0x216   :  { %v957_v55 = vpop.f32.mrf.mxu0  ;;  %v520_v56 = vadd.f32 -0.21428572, %v519_v54 }
 0x217   :  { %v958_v57 = vadd.f32 -0.21428572, %v957_v55  ;;  %v1468_v58 = vpop.f32.mrf.mxu1 }
 0x218   :  { %v1615_v59 = vpop.f32.mrf.mxu0  ;;  %639 = vst [vmem:[%s2259_s3 + $0x30] sm:$0xff] %v520_v56 }
 0x219   :  { %1239 = vst [vmem:[%s2259_s3 + $0x118] sm:$0xff] %v958_v57  ;;  %v524_v60 = vpop.f32.mrf.mxu1 }
 0x21a   :  { %v962_v61 = vpop.f32.mrf.mxu0  ;;  %v525_v62 = vadd.f32 -0.21428572, %v524_v60 }
 0x21b   :  { %v963_v63 = vadd.f32 -0.21428572, %v962_v61  ;;  %v1471_v0 = vpop.f32.mrf.mxu1 }
 0x21c   :  { %v1618_v1 = vpop.f32.mrf.mxu0  ;;  %640 = vst [vmem:[%s2259_s3 + $0x38] sm:$0xff] %v525_v62 }
 0x21d   :  { %1240 = vst [vmem:[%s2259_s3 + $0x120] sm:$0xff] %v963_v63  ;;  %v529_v2 = vpop.f32.mrf.mxu1 }
 0x21e   :  { %v967_v3 = vpop.f32.mrf.mxu0  ;;  %v530_v4 = vadd.f32 -0.21428572, %v529_v2 }
 0x21f   :  { %v968_v5 = vadd.f32 -0.21428572, %v967_v3  ;;  %v1474_v6 = vpop.f32.mrf.mxu1 }
 0x220   :  { %v1621_v7 = vpop.f32.mrf.mxu0  ;;  %641 = vst [vmem:[%s2259_s3 + $0x40] sm:$0xff] %v530_v4 }
 0x221   :  { %1241 = vst [vmem:[%s2259_s3 + $0x128] sm:$0xff] %v968_v5  ;;  %v534_v8 = vpop.f32.mrf.mxu1 }
 0x222   :  { %v972_v9 = vpop.f32.mrf.mxu0  ;;  %v535_v10 = vadd.f32 -0.21428572, %v534_v8 }
 0x223   :  { %v973_v11 = vadd.f32 -0.21428572, %v972_v9  ;;  %v1477_v12 = vpop.f32.mrf.mxu1 }
 0x224   :  { %v1624_v13 = vpop.f32.mrf.mxu0  ;;  %642 = vst [vmem:[%s2259_s3 + $0x48] sm:$0xff] %v535_v10 }
 0x225   :  { %1242 = vst [vmem:[%s2259_s3 + $0x130] sm:$0xff] %v973_v11  ;;  %v539_v14 = vpop.f32.mrf.mxu1 }
 0x226   :  { %v977_v15 = vpop.f32.mrf.mxu0  ;;  %v540_v16 = vadd.f32 -0.21428572, %v539_v14 }
 0x227   :  { %v978_v17 = vadd.f32 -0.21428572, %v977_v15  ;;  %v1480_v18 = vpop.f32.mrf.mxu1 }
 0x228   :  { %v1627_v19 = vpop.f32.mrf.mxu0  ;;  %643 = vst [vmem:[%s2259_s3 + $0x50] sm:$0xff] %v540_v16 }
 0x229   :  { %1243 = vst [vmem:[%s2259_s3 + $0x138] sm:$0xff] %v978_v17  ;;  %v544_v21 = vpop.f32.mrf.mxu1 }
 0x22a   :  { %v982_v22 = vpop.f32.mrf.mxu0  ;;  %v545_v23 = vadd.f32 -0.21428572, %v544_v21 }
 0x22b   :  { %v983_v24 = vadd.f32 -0.21428572, %v982_v22  ;;  %v1483_v20 = vpop.f32.mrf.mxu1 }
 0x22c   :  { %v1630_v25 = vpop.f32.mrf.mxu0  ;;  %644 = vst [vmem:[%s2259_s3 + $0x58] sm:$0xff] %v545_v23 }
 0x22d   :  { %1244 = vst [vmem:[%s2259_s3 + $0x140] sm:$0xff] %v983_v24  ;;  %v549_v26 = vpop.f32.mrf.mxu1 }
 0x22e   :  { %v987_v27 = vpop.f32.mrf.mxu0  ;;  %v550_v28 = vadd.f32 -0.21428572, %v549_v26 }
 0x22f   :  { %v988_v29 = vadd.f32 -0.21428572, %v987_v27  ;;  %v1486_v30 = vpop.f32.mrf.mxu1 }
 0x230   :  { %v1633_v31 = vpop.f32.mrf.mxu0  ;;  %645 = vst [vmem:[%s2259_s3 + $0x60] sm:$0xff] %v550_v28 }
 0x231   :  { %1245 = vst [vmem:[%s2259_s3 + $0x148] sm:$0xff] %v988_v29  ;;  %v554_v32 = vpop.f32.mrf.mxu1 }
 0x232   :  { %v992_v33 = vpop.f32.mrf.mxu0  ;;  %v555_v34 = vadd.f32 -0.21428572, %v554_v32 }
 0x233   :  { %v993_v35 = vadd.f32 -0.21428572, %v992_v33  ;;  %v1489_v36 = vpop.f32.mrf.mxu1 }
 0x234   :  { %v1636_v37 = vpop.f32.mrf.mxu0  ;;  %646 = vst [vmem:[%s2259_s3 + $0x68] sm:$0xff] %v555_v34 }
 0x235   :  { %1246 = vst [vmem:[%s2259_s3 + $0x150] sm:$0xff] %v993_v35  ;;  %v559_v38 = vpop.f32.mrf.mxu1 }
 0x236   :  { %v997_v39 = vpop.f32.mrf.mxu0  ;;  %v560_v40 = vadd.f32 -0.21428572, %v559_v38 }
 0x237   :  { %v998_v41 = vadd.f32 -0.21428572, %v997_v39  ;;  %v1492_v42 = vpop.f32.mrf.mxu1 }
 0x238   :  { %v1639_v43 = vpop.f32.mrf.mxu0  ;;  %647 = vst [vmem:[%s2259_s3 + $0x70] sm:$0xff] %v560_v40 }
 0x239   :  { %1247 = vst [vmem:[%s2259_s3 + $0x158] sm:$0xff] %v998_v41  ;;  %v564_v44 = vpop.f32.mrf.mxu1 }
 0x23a   :  { %v1002_v45 = vpop.f32.mrf.mxu0  ;;  %v565_v46 = vadd.f32 -0.21428572, %v564_v44 }
 0x23b   :  { %v1003_v47 = vadd.f32 -0.21428572, %v1002_v45  ;;  %v1495_v48 = vpop.f32.mrf.mxu1 }
 0x23c   :  { %v1642_v49 = vpop.f32.mrf.mxu0  ;;  %648 = vst [vmem:[%s2259_s3 + $0x78] sm:$0xff] %v565_v46 }
 0x23d   :  { %1248 = vst [vmem:[%s2259_s3 + $0x160] sm:$0xff] %v1003_v47  ;;  %v569_v50 = vpop.f32.mrf.mxu1 }
 0x23e   :  { %v1007_v51 = vpop.f32.mrf.mxu0  ;;  %v570_v52 = vadd.f32 -0.21428572, %v569_v50 }
 0x23f   :  { %v1008_v53 = vadd.f32 -0.21428572, %v1007_v51  ;;  %v1498_v54 = vpop.f32.mrf.mxu1 }
 0x240   :  { %v1645_v55 = vpop.f32.mrf.mxu0  ;;  %649 = vst [vmem:[%s2259_s3 + $0x80] sm:$0xff] %v570_v52 }
 0x241   :  { %1249 = vst [vmem:[%s2259_s3 + $0x168] sm:$0xff] %v1008_v53  ;;  %v574_v56 = vpop.f32.mrf.mxu1 }
 0x242   :  { %v1012_v57 = vpop.f32.mrf.mxu0  ;;  %v575_v58 = vadd.f32 -0.21428572, %v574_v56 }
 0x243   :  { %v1013_v59 = vadd.f32 -0.21428572, %v1012_v57  ;;  %v1501_v60 = vpop.f32.mrf.mxu1 }
 0x244   :  { %v1648_v61 = vpop.f32.mrf.mxu0  ;;  %650 = vst [vmem:[%s2259_s3 + $0x88] sm:$0xff] %v575_v58 }
 0x245   :  { %1250 = vst [vmem:[%s2259_s3 + $0x170] sm:$0xff] %v1013_v59  ;;  %v579_v62 = vpop.f32.mrf.mxu1 }
 0x246   :  { %v1017_v63 = vpop.f32.mrf.mxu0  ;;  %v580_v0 = vadd.f32 -0.21428572, %v579_v62 }
 0x247   :  { %v1018_v1 = vadd.f32 -0.21428572, %v1017_v63  ;;  %v1504_v2 = vpop.f32.mrf.mxu1 }
 0x248   :  { %v1651_v3 = vpop.f32.mrf.mxu0  ;;  %651 = vst [vmem:[%s2259_s3 + $0x90] sm:$0xff] %v580_v0 }
 0x249   :  { %1251 = vst [vmem:[%s2259_s3 + $0x178] sm:$0xff] %v1018_v1  ;;  %v584_v4 = vpop.f32.mrf.mxu1 }
 0x24a   :  { %v1022_v5 = vpop.f32.mrf.mxu0  ;;  %v585_v6 = vadd.f32 -0.21428572, %v584_v4 }
 0x24b   :  { %v1023_v7 = vadd.f32 -0.21428572, %v1022_v5  ;;  %v1507_v8 = vpop.f32.mrf.mxu1 }
 0x24c   :  { %v1654_v9 = vpop.f32.mrf.mxu0  ;;  %652 = vst [vmem:[%s2259_s3 + $0x98] sm:$0xff] %v585_v6 }
 0x24d   :  { %1252 = vst [vmem:[%s2259_s3 + $0x180] sm:$0xff] %v1023_v7  ;;  %v589_v10 = vpop.f32.mrf.mxu1 }
 0x24e   :  { %v1027_v11 = vpop.f32.mrf.mxu0  ;;  %v590_v12 = vadd.f32 -0.21428572, %v589_v10 }
 0x24f   :  { %v1028_v13 = vadd.f32 -0.21428572, %v1027_v11  ;;  %v1510_v14 = vpop.f32.mrf.mxu1 }
 0x250   :  { %v1657_v15 = vpop.f32.mrf.mxu0  ;;  %653 = vst [vmem:[%s2259_s3 + $0xa0] sm:$0xff] %v590_v12 }
 0x251   :  { %1253 = vst [vmem:[%s2259_s3 + $0x188] sm:$0xff] %v1028_v13  ;;  %v594_v16 = vpop.f32.mrf.mxu1 }
 0x252   :  { %v1032_v17 = vpop.f32.mrf.mxu0  ;;  %v595_v18 = vadd.f32 -0.21428572, %v594_v16 }
 0x253   :  { %v1033_v19 = vadd.f32 -0.21428572, %v1032_v17  ;;  %v1513_v21 = vpop.f32.mrf.mxu1 }
 0x254   :  { %v1660_v22 = vpop.f32.mrf.mxu0  ;;  %654 = vst [vmem:[%s2259_s3 + $0xa8] sm:$0xff] %v595_v18 }
 0x255   :  { %1254 = vst [vmem:[%s2259_s3 + $0x190] sm:$0xff] %v1033_v19  ;;  %v599_v23 = vpop.f32.mrf.mxu1 }
 0x256   :  { %v1037_v24 = vpop.f32.mrf.mxu0  ;;  %v600_v20 = vadd.f32 -0.21428572, %v599_v23 }
 0x257   :  { %v1038_v25 = vadd.f32 -0.21428572, %v1037_v24  ;;  %v1516_v26 = vpop.f32.mrf.mxu1 }
 0x258   :  { %v1663_v27 = vpop.f32.mrf.mxu0  ;;  %655 = vst [vmem:[%s2259_s3 + $0xb0] sm:$0xff] %v600_v20 }
 0x259   :  { %1255 = vst [vmem:[%s2259_s3 + $0x198] sm:$0xff] %v1038_v25  ;;  %v604_v28 = vpop.f32.mrf.mxu1 }
 0x25a   :  { %v1042_v29 = vpop.f32.mrf.mxu0  ;;  %v605_v30 = vadd.f32 -0.21428572, %v604_v28 }
 0x25b   :  { %v1043_v31 = vadd.f32 -0.21428572, %v1042_v29  ;;  %v1519_v32 = vpop.f32.mrf.mxu1 }
 0x25c   :  { %v1666_v33 = vpop.f32.mrf.mxu0  ;;  %656 = vst [vmem:[%s2259_s3 + $0xb8] sm:$0xff] %v605_v30 }
 0x25d   :  { %1256 = vst [vmem:[%s2259_s3 + $0x1a0] sm:$0xff] %v1043_v31  ;;  %v609_v34 = vpop.f32.mrf.mxu1 }
 0x25e   :  { %v1047_v35 = vpop.f32.mrf.mxu0  ;;  %v610_v36 = vadd.f32 -0.21428572, %v609_v34 }
 0x25f   :  { %v1048_v37 = vadd.f32 -0.21428572, %v1047_v35  ;;  %v1522_v38 = vpop.f32.mrf.mxu1 }
 0x260   :  { %v1669_v39 = vpop.f32.mrf.mxu0  ;;  %657 = vst [vmem:[%s2259_s3 + $0xc0] sm:$0xff] %v610_v36 }
 0x261   :  { %1257 = vst [vmem:[%s2259_s3 + $0x1a8] sm:$0xff] %v1048_v37  ;;  %v614_v40 = vpop.f32.mrf.mxu1 }
 0x262   :  { %v1052_v41 = vpop.f32.mrf.mxu0  ;;  %v615_v42 = vadd.f32 -0.21428572, %v614_v40 }
 0x263   :  { %v1053_v43 = vadd.f32 -0.21428572, %v1052_v41  ;;  %v1525_v44 = vpop.f32.mrf.mxu1 }
 0x264   :  { %v1672_v45 = vpop.f32.mrf.mxu0  ;;  %658 = vst [vmem:[%s2259_s3 + $0xc8] sm:$0xff] %v615_v42 }
 0x265   :  { %1258 = vst [vmem:[%s2259_s3 + $0x1b0] sm:$0xff] %v1053_v43  ;;  %v619_v46 = vpop.f32.mrf.mxu1 }
 0x266   :  { %v1057_v47 = vpop.f32.mrf.mxu0  ;;  %v620_v48 = vadd.f32 -0.21428572, %v619_v46 }
 0x267   :  { %v1058_v49 = vadd.f32 -0.21428572, %v1057_v47  ;;  %v1528_v50 = vpop.f32.mrf.mxu1 }
 0x268   :  { %v1675_v51 = vpop.f32.mrf.mxu0  ;;  %659 = vst [vmem:[%s2259_s3 + $0xd0] sm:$0xff] %v620_v48 }
 0x269   :  { %1259 = vst [vmem:[%s2259_s3 + $0x1b8] sm:$0xff] %v1058_v49  ;;  %v624_v52 = vpop.f32.mrf.mxu1 }
 0x26a   :  { %v1062_v53 = vpop.f32.mrf.mxu0  ;;  %v625_v54 = vadd.f32 -0.21428572, %v624_v52 }
 0x26b   :  { %v1063_v55 = vadd.f32 -0.21428572, %v1062_v53  ;;  %v1531_v56 = vpop.f32.mrf.mxu1 }
 0x26c   :  { %v1678_v57 = vpop.f32.mrf.mxu0  ;;  %660 = vst [vmem:[%s2259_s3 + $0xd8] sm:$0xff] %v625_v54 }
 0x26d   :  { %1260 = vst [vmem:[%s2259_s3 + $0x1c0] sm:$0xff] %v1063_v55  ;;  %v629_v58 = vpop.f32.mrf.mxu1 }
 0x26e   :  { %v1067_v59 = vpop.f32.mrf.mxu0  ;;  %v630_v60 = vadd.f32 -0.21428572, %v629_v58 }
 0x26f   :  { %v1068_v61 = vadd.f32 -0.21428572, %v1067_v59  ;;  %v1534_v62 = vpop.f32.mrf.mxu1 }
 0x270   :  { %v1681_v63 = vpop.f32.mrf.mxu0  ;;  %661 = vst [vmem:[%s2259_s3 + $0xe0] sm:$0xff] %v630_v60 }
 0x271   :  { %1261 = vst [vmem:[%s2259_s3 + $0x1c8] sm:$0xff] %v1068_v61 }
 0x272   :  { %1105 = vsyncpa [#allocation3], 1 }
 0x273   :  { %1106 = vsyncpa [#allocation5], 1 }

</bundles_post_ra>
